<compile_context>
chip_gen: v5e
topology: v5e:2x2
jax: 0.10.0
libtpu: 0.0.40
codegen_flags: <defaults>
</compile_context>

<pallas_src>
import functools

import jax
import jax.numpy as jnp
from jax import lax
from jax.experimental import pallas as pl
from jax.experimental.pallas import tpu as pltpu


def _pick_block_b(batch, k, hw, in_itemsize, vmem_budget_bytes=8 * 1024 * 1024):
    """Largest batch tile whose double-buffered inputs + f32 temps fit a
    conservative VMEM budget (safe for v7x's 64 MiB VMEM; v5e/v6e could go
    larger)."""
    # pred + label, each double-buffered at native dtype, plus ~2 f32 temps.
    per_sample = k * hw * (2 * 2 * in_itemsize + 2 * 4)
    tb = max(1, vmem_budget_bytes // max(per_sample, 1))
    return int(min(tb, batch, 128))


def _joints_l2_kernel(pred_ref, valid_ref, label_ref, out_ref, *,
                      has_ohkm, topk, t1, t2, block_b, true_b):
    tb, k, hw = pred_ref.shape
    chunk = pl.program_id(0)

    # Cast in-kernel (free VPU work) instead of materializing f32 copies in HBM.
    pred = pred_ref[...].astype(jnp.float32)      # (TB, K, HW)
    gt = label_ref[...].astype(jnp.float32)       # (TB, K, HW)
    valid = valid_ref[...].astype(jnp.float32)    # (TB, K, 1)

    # Rows of this block that correspond to real (un-padded) samples.
    row = lax.broadcasted_iota(jnp.int32, (tb, k), 0)
    in_range = (chunk * block_b + row) < true_b   # (TB, K) bool

    if not has_ohkm:
        # gt zeroed wherever valid <= t1, then MSE(mean) over K*HW per sample.
        w = (valid > t1).astype(jnp.float32)      # (TB, K, 1)
        diff = pred - gt * w                      # (TB, K, HW)
        ss = jnp.sum(diff * diff, axis=-1)        # lane reduce -> (TB, K)
        ss = jnp.where(in_range, ss, 0.0)         # drop padded samples
        # Sum of per-sample mean losses for this chunk.
        block_loss = jnp.sum(ss) * (1.0 / float(k * hw))
    else:
        # Per-keypoint MSE, weighted by (valid > t2); mean of top-k per sample.
        diff = pred - gt
        per_kp = jnp.sum(diff * diff, axis=-1) * (1.0 / float(hw))   # (TB, K)
        wk = jnp.reshape(valid, (tb, k)) > t2
        per_kp = jnp.where(jnp.logical_and(wk, in_range), per_kp, 0.0)

        # Iterative max extraction along K (lane axis), statically unrolled.
        col = lax.broadcasted_iota(jnp.int32, (tb, k), 1)
        acc = jnp.zeros((tb, 1), jnp.float32)
        vals = per_kp
        for _ in range(topk):                                        # static
            m = jnp.max(vals, axis=-1, keepdims=True)                # (TB, 1)
            hit = jnp.min(jnp.where(vals == m, col, k),
                          axis=-1, keepdims=True)                    # first max
            vals = jnp.where(col == hit, -jnp.inf, vals)
            acc = acc + m
        block_loss = jnp.sum(acc) * (1.0 / float(topk))

    out_ref[...] = jnp.full(out_ref.shape, block_loss, dtype=jnp.float32)


def joints_l2_loss(output, valid, label, has_ohkm=False, topk=8,
                   thresh1=1, thresh2=0, block_b=None):
    """Pallas implementation of MSPN JointsL2Loss.forward."""
    assert output.shape == label.shape
    B, K = int(output.shape[0]), int(output.shape[1])
    HW = 1
    for d in output.shape[2:]:
        HW *= int(d)
    if has_ohkm:
        assert topk <= K, "topk must not exceed the number of keypoints"

    # Reshape only — keep native dtype; the kernel casts after the load.
    pred = output.reshape(B, K, HW)
    gt = label.reshape(B, K, HW)
    val = valid.reshape(B, K, 1)

    if block_b is None:
        block_b = _pick_block_b(B, K, HW, jnp.dtype(pred.dtype).itemsize)
    block_b = int(max(1, min(block_b, B)))

    num_chunks = -(-B // block_b)
    b_pad = num_chunks * block_b
    if b_pad != B:
        # Zero-pad the batch so every grid step sees a full block; padded
        # samples are also masked inside the kernel so they contribute 0.
        pw = ((0, b_pad - B), (0, 0), (0, 0))
        pred = jnp.pad(pred, pw)
        gt = jnp.pad(gt, pw)
        val = jnp.pad(val, pw)

    kernel = functools.partial(
        _joints_l2_kernel,
        has_ohkm=has_ohkm, topk=int(topk),
        t1=float(thresh1), t2=float(thresh2),
        block_b=block_b, true_b=B)

    partial_sums = pl.pallas_call(
        kernel,
        out_shape=jax.ShapeDtypeStruct((num_chunks, 1, 1), jnp.float32),
        grid=(num_chunks,),
        in_specs=[
            pl.BlockSpec((block_b, K, HW), lambda i: (i, 0, 0)),   # pred
            pl.BlockSpec((block_b, K, 1), lambda i: (i, 0, 0)),    # valid
            pl.BlockSpec((block_b, K, HW), lambda i: (i, 0, 0)),   # label
        ],
        out_specs=pl.BlockSpec((1, 1, 1), lambda i: (i, 0, 0)),
        compiler_params=pltpu.CompilerParams(
            dimension_semantics=("parallel",),
            vmem_limit_bytes=32 * 1024 * 1024),
    )(pred, val, gt)

    # loss = (sum of per-sample losses) / batch_size
    return jnp.sum(partial_sums) / B


def ref_joints_l2_loss(output, valid, label, has_ohkm=False, topk=8,
                       thresh1=1, thresh2=0):
    """Pure-JAX reference mirroring the PyTorch module."""
    B, K = output.shape[0], output.shape[1]
    pred = output.reshape(B, K, -1)
    gt = label.reshape(B, K, -1)
    valid = valid.reshape(B, K, 1)
    loss = 0.0
    for i in range(B):
        p, g = pred[i], gt[i]
        if not has_ohkm:
            w = (valid[i] > thresh1).astype(jnp.float32)
            g = g * w
            sample_loss = jnp.mean((p - g) ** 2)
        else:
            per = jnp.mean((p - g) ** 2, axis=1)
            w = (jnp.squeeze(valid[i]) > thresh2).astype(jnp.float32)
            per = per * w
            topk_val, _ = lax.top_k(per, topk)
            sample_loss = jnp.mean(topk_val)
        loss = loss + sample_loss
    return loss / B


if __name__ == "__main__":
    key = jax.random.PRNGKey(0)
    B, K, H, W = 5, 8, 16, 16
    k1, k2, k3 = jax.random.split(key, 3)
    output = jax.random.normal(k1, (B, K, H, W), dtype=jnp.float32)
    label = jax.random.normal(k2, (B, K, H, W), dtype=jnp.float32)
    valid = jax.random.randint(k3, (B, K, 1), 0, 3).astype(jnp.float32)

    ref = ref_joints_l2_loss(output, valid, label)

    # default (mean-MSE) mode, small block -> exercises the padded last chunk.
    loss = jax.block_until_ready(joints_l2_loss(output, valid, label, block_b=2))
    assert jnp.allclose(loss, ref, rtol=1e-5, atol=1e-6), (loss, ref)

    # default mode with the auto-sized (single-chunk) block.
    loss_auto = jax.block_until_ready(joints_l2_loss(output, valid, label))
    assert jnp.allclose(loss_auto, ref, rtol=1e-5, atol=1e-6), (loss_auto, ref)

    # OHKM mode.
    loss_ohkm = jax.block_until_ready(
        joints_l2_loss(output, valid, label, has_ohkm=True, topk=4, block_b=2))
    ref_ohkm = ref_joints_l2_loss(output, valid, label, has_ohkm=True, topk=4)
    assert jnp.allclose(loss_ohkm, ref_ohkm, rtol=1e-5, atol=1e-6), (loss_ohkm, ref_ohkm)

    print("KERNEL_OK")
</pallas_src>

<mosaic_0001>
module attributes {stable_mosaic.version = 11 : i64} {
  func.func @_joints_l2_kernel(%arg0: i32, %arg1: memref<2x8x256xf32, #tpu.memory_space<vmem>>, %arg2: memref<2x8x1xf32, #tpu.memory_space<vmem>>, %arg3: memref<2x8x256xf32, #tpu.memory_space<vmem>>, %arg4: memref<1x1x1xf32, #tpu.memory_space<vmem>>) attributes {dimension_semantics = [#tpu.dimension_semantics<parallel>], iteration_bounds = array<i64: 3>, scalar_prefetch = 0 : i64, scratch_operands = 0 : i64, tpu.core_type = #tpu.core_type<tc>, window_params = [{transform_indices = @transform_0, window_bounds = array<i64: 2, 8, 256>}, {transform_indices = @transform_1, window_bounds = array<i64: 2, 8, 1>}, {transform_indices = @transform_2, window_bounds = array<i64: 2, 8, 256>}, {transform_indices = @transform_3, window_bounds = array<i64: 1, 1, 1>}]} {
    %c0 = arith.constant 0 : index
    %c0_0 = arith.constant 0 : index
    %c0_1 = arith.constant 0 : index
    %0 = vector.load %arg1[%c0, %c0_0, %c0_1] : memref<2x8x256xf32, #tpu.memory_space<vmem>>, vector<2x8x256xf32>
    %c0_2 = arith.constant 0 : index
    %c0_3 = arith.constant 0 : index
    %c0_4 = arith.constant 0 : index
    %1 = vector.load %arg3[%c0_2, %c0_3, %c0_4] : memref<2x8x256xf32, #tpu.memory_space<vmem>>, vector<2x8x256xf32>
    %c0_5 = arith.constant 0 : index
    %c0_6 = arith.constant 0 : index
    %c0_7 = arith.constant 0 : index
    %2 = vector.load %arg2[%c0_5, %c0_6, %c0_7] : memref<2x8x1xf32, #tpu.memory_space<vmem>>, vector<2x8x1xf32>
    %3 = tpu.iota {dimensions = array<i32: 0>} : vector<2x8xi32>
    %c2_i32 = arith.constant 2 : i32
    %4 = arith.muli %arg0, %c2_i32 : i32
    %5 = vector.broadcast %4 : i32 to vector<2x8xi32>
    %6 = arith.addi %5, %3 : vector<2x8xi32>
    %c5_i32 = arith.constant 5 : i32
    %7 = vector.broadcast %c5_i32 : i32 to vector<2x8xi32>
    %8 = arith.cmpi slt, %6, %7 : vector<2x8xi32>
    %cst = arith.constant 1.000000e+00 : f32
    %9 = vector.broadcast %cst : f32 to vector<2x8x1xf32>
    %10 = arith.cmpf ogt, %2, %9 : vector<2x8x1xf32>
    %11 = arith.extui %10 : vector<2x8x1xi1> to vector<2x8x1xi32>
    %12 = arith.sitofp %11 : vector<2x8x1xi32> to vector<2x8x1xf32>
    %13 = vector.broadcast %12 : vector<2x8x1xf32> to vector<2x8x256xf32>
    %14 = arith.mulf %1, %13 : vector<2x8x256xf32>
    %15 = arith.subf %0, %14 : vector<2x8x256xf32>
    %16 = arith.mulf %15, %15 : vector<2x8x256xf32>
    %cst_8 = arith.constant dense<0.000000e+00> : vector<2x8xf32>
    %17 = vector.multi_reduction <add>, %16, %cst_8 [2] : vector<2x8x256xf32> to vector<2x8xf32>
    %cst_9 = arith.constant 0.000000e+00 : f32
    %18 = vector.broadcast %cst_9 : f32 to vector<2x8xf32>
    %19 = arith.select %8, %17, %18 : vector<2x8xi1>, vector<2x8xf32>
    %20 = vector.shape_cast %19 : vector<2x8xf32> to vector<1x2x8xf32>
    %cst_10 = arith.constant dense<0.000000e+00> : vector<1xf32>
    %21 = vector.multi_reduction <add>, %20, %cst_10 [1, 2] : vector<1x2x8xf32> to vector<1xf32>
    %22 = vector.shape_cast %21 : vector<1xf32> to vector<1x1x1xf32>
    %23 = vector.extract %22[0, 0, 0] : f32 from vector<1x1x1xf32>
    %cst_11 = arith.constant 4.8828125E-4 : f32
    %24 = arith.mulf %23, %cst_11 : f32
    %25 = vector.broadcast %24 : f32 to vector<1x1x1xf32>
    %c0_12 = arith.constant 0 : index
    %c0_13 = arith.constant 0 : index
    %c0_14 = arith.constant 0 : index
    %26 = vector.load %arg4[%c0_12, %c0_13, %c0_14] : memref<1x1x1xf32, #tpu.memory_space<vmem>>, vector<1x1x1xf32>
    tpu.vector_store %arg4[%c0_12, %c0_13, %c0_14], %25 {strides = array<i32>} : memref<1x1x1xf32, #tpu.memory_space<vmem>>, vector<1x1x1xf32>,
    return
  }
  func.func @transform_0(%arg0: i32) -> (i32, i32, i32) {
    %c0_i32 = arith.constant 0 : i32
    %c0_i32_0 = arith.constant 0 : i32
    %c0_i32_1 = arith.constant 0 : i32
    return %arg0, %c0_i32, %c0_i32_0 : i32, i32, i32
  }
  func.func @transform_1(%arg0: i32) -> (i32, i32, i32) {
    %c0_i32 = arith.constant 0 : i32
    %c0_i32_0 = arith.constant 0 : i32
    %c0_i32_1 = arith.constant 0 : i32
    return %arg0, %c0_i32, %c0_i32_0 : i32, i32, i32
  }
  func.func @transform_2(%arg0: i32) -> (i32, i32, i32) {
    %c0_i32 = arith.constant 0 : i32
    %c0_i32_0 = arith.constant 0 : i32
    %c0_i32_1 = arith.constant 0 : i32
    return %arg0, %c0_i32, %c0_i32_0 : i32, i32, i32
  }
  func.func @transform_3(%arg0: i32) -> (i32, i32, i32) {
    %c0_i32 = arith.constant 0 : i32
    %c0_i32_0 = arith.constant 0 : i32
    %c0_i32_1 = arith.constant 0 : i32
    return %arg0, %c0_i32, %c0_i32_0 : i32, i32, i32
  }
}

</mosaic_0001>

<bundles_post_ra>
// kernel: tpu_custom_call.1
= control target key start
LH: loop header
LB: loop body
LE: loop exit
PB: predicated region body
PF: predicated region fallthrough
CT: control target
= control target key end

     0   :  { %8 = vsyncpa [#allocation3], 0  ;;  %s778_s0 = inlined_call_operand.hbm [shape: f32[6,8,256], index: 0, kind: input, shape index: {}]   ;;  %s779_s1 = inlined_call_operand.vmem [shape: f32[6,8,1], index: 1, kind: input, shape index: {}]   ;;  %s780_s2 = inlined_call_operand.hbm [shape: f32[6,8,256], index: 2, kind: input, shape index: {}]   ;;  %s781_s3 = inlined_call_operand.vmem [shape: f32[3,1,1], index: 3, kind: output, shape index: {}]  }
   0x1   :  { %10 = vsyncpa [#allocation3 + $0x1], 0 }
   0x2   :  { %11 = vsyncpa [#allocation5], 0 }
   0x3   :  { %13 = vsyncpa [#allocation5 + $0x1], 0  ;;  %s631_s12 = smov 0   ;;  %s633_s13 = smov 0  }
   0x4   :  { %s635_s14 = smov 0   ;;  %s637_s15 = smov 0  }
   0x5 LB: > { %s650_s16 = sadd.s32 4294967295, %s605_s15   ;;  %s653_s17 = sadd.s32 1, %s605_s15   ;;  %s605_s15 = sphi %s637_s15, %s789_s15   ;;  %s601_s14 = sphi %s635_s14, %s788_s14   ;;  %s597_s13 = sphi %s633_s13, %s787_s13   ;;  %s593_s12 = sphi %s631_s12, %s786_s12  }
   0x6   : > { %s23_s18 = ssub.s32 %s605_s15, %s653_s17  ;;  %s26_s19 = sadd.s32 1, %s601_s14 }
   0x7   : > { %p24_p0 = scmp.eq.s32.totalorder %s23_s18, 0  ;;  %p33_p1 = scmp.ne.s32.totalorder %s601_s14, %s597_s13 }
   0x8   : > { %p34_p2 = scmp.eq.s32.totalorder %s605_s15, 0  ;;  %p39_p3 = scmp.ne.s32.totalorder %s597_s13, %s593_s12 }
   0x9   : > { %s663_s20 = scalar_select %p24_p0, %s601_s14, %s26_s19  }
   0xa   : > { %p665_p4 = por %p34_p2, %p33_p1  ;;  %p40_p5 = scmp.eq.s32.totalorder %s650_s16, 0 }
   0xb   : > { %p464_p6 = scmp.lt.s32.totalorder %s605_s15, 3  ;;  %s676_s23 = sand.u32 1, %s601_s14  }
   0xc   : > { %p671_p7 = por %p40_p5, %p39_p3  ;;  %s429_s24 = sshll.u32 %s676_s23, 5 }
   0xd   : > { %s448_s25 = sshll.u32 %s605_s15, 5  ;;  %s145_s29 = scalar_lea.vmem [#allocation2], %s429_s24 }
   0xe   : > { %s151_s28 = scalar_lea.hbm %s778_s0, %s448_s25  ;;  %s154_s30 = sshll.u32 %s145_s29, 4  ;;  %s155_s30 = int_to_ptr.vmem [resolvable:$true] %s154_s30 }
   0xf   : > { %s152_s4 = sshll.u32 %s151_s28, 4  ;;  %p689_p8 = pnand %p464_p6, %p665_p4  ;;  %s153_s4 = int_to_ptr.hbm [resolvable:$true] %s152_s4 }
  0x10   : > { %p437_p9 = scmp.ge.s32.totalorder %s605_s15, 1  ;;  %s142_s6 = scalar_lea.sflag [#allocation3], %s676_s23 }
  0x11   : > { %s507_s7 = sshra.s32 %s153_s4, 4  ;;  %p511_p11 = pneg %p689_p8  ;;  %s508_s7 = int_to_ptr.hbm [resolvable:$true] %s507_s7 }
  0x12   : > { %s509_s8 = scalar_lea.hbm %s508_s7, 32  ;;  %s514_s11 = scalar_lea.hbm %s778_s0, 96 }
  0x13   : > { %p510_p10 = scmp.ne.s32.totalorder %s508_s7, %s509_s8  ;;  %p515_p0 = scmp.lt.s32.totalorder %s508_s7, %s778_s0 }
  0x14   : > { %p516_p1 = scmp.lt.s32.totalorder %s514_s11, %s509_s8 }
  0x15   : > { %p512_p12 = pnand %p511_p11, %p510_p10 }
  0x16   : > { %p517_p2 = por %p516_p1, %p515_p0 }
  0x17   : > { %p513_p13 = pneg %p512_p12 }
  0x19   : > { %p518_p3 = pnand %p517_p2, %p513_p13 }
  0x1b   : > { %521 = shalt.err (!%p518_p3)
}
  0x1c   : > { %s607_s19 = smov 256   ;;  %s608_s21 = smov 16  }
  0x1d   : > { %460 = dma.hbm_to_vmem [thread:$0]  (!%p689_p8), %s153_s4, 512, %s155_s30, %s142_s6, %s607_s19, %s607_s19, %s608_s21  }
  0x1e   : > { %p194_p4 = scmp.lt.s32.totalorder %s605_s15, 4  ;;  %s183_s28 = scalar_lea.hbm %s780_s2, %s448_s25 }
  0x1f   : > { %s184_s7 = sshll.u32 %s183_s28, 4  ;;  %s177_s8 = scalar_lea.vmem [#allocation4], %s429_s24  ;;  %s185_s7 = int_to_ptr.hbm [resolvable:$true] %s184_s7 }
  0x20   : > { %p716_p5 = pnand %p437_p9, %p194_p4  ;;  %s186_s9 = sshll.u32 %s177_s8, 4  ;;  %s187_s9 = int_to_ptr.vmem [resolvable:$true] %s186_s9 }
  0x21   : > { %s174_s10 = scalar_lea.sflag [#allocation5], %s676_s23  ;;  %s537_s11 = sshra.s32 %s185_s7, 4  ;;  %s538_s11 = int_to_ptr.hbm [resolvable:$true] %s537_s11 }
  0x22   : > { %s539_s30 = scalar_lea.hbm %s538_s11, 32  ;;  %s544_s4 = scalar_lea.hbm %s780_s2, 96 }
  0x23   : > { %p540_p6 = scmp.ne.s32.totalorder %s538_s11, %s539_s30  ;;  %p545_p9 = scmp.lt.s32.totalorder %s538_s11, %s780_s2 }
  0x24   : > { %p546_p13 = scmp.lt.s32.totalorder %s544_s4, %s539_s30 }
  0x25   : > { %p542_p10 = pnand %p540_p6, %p511_p11 }
  0x26   : > { %p547_p0 = por %p546_p13, %p545_p9 }
  0x27   : > { %p543_p12 = pneg %p542_p10 }
  0x29   : > { %p548_p1 = pnand %p547_p0, %p543_p12 }
  0x2b   : > { %551 = shalt.err (!%p548_p1)
}
  0x2c   : > { %463 = dma.hbm_to_vmem [thread:$0]  (!%p689_p8), %s185_s7, 512, %s187_s9, %s174_s10, %s607_s19, %s607_s19, %s608_s21  }
  0x2d   : > { %198 = sbr.rel (%p716_p5) target bundleno = 493 (0x1ed), region = 32  ;;  %s200_s23 = sand.u32 (!%p716_p5), 1, %s597_s13  }
  0x2e   : > { %s438_s24 = sshll.u32 (!%p716_p5), %s200_s23, 5  ;;  %s201_s18 = scalar_lea.sflag (!%p716_p5), [#allocation3], %s200_s23 }
  0x2f   : > { %s737_s26 = scalar_lea.vmem (!%p716_p5), [#allocation2], %s438_s24 }
  0x32   : > { %584 = dma.done.wait (%p671_p7), %s201_s18, 512  }
  0x33   : > { %586 = vsyncadd (%p671_p7), %s201_s18, 4294966784  ;;  %s211_s27 = scalar_lea.sflag [#allocation5], %s200_s23  ;;  %s214_s28 = scalar_lea.vmem [#allocation4], %s438_s24 }
  0x34   : > { %588 = dma.done.wait (%p671_p7), %s211_s27, 512  }
  0x35   : > { %590 = vsyncadd (%p671_p7), %s211_s27, 4294966784  ;;  %s748_s5 = sshll.u32 %s650_s16, 1  ;;  %v609_v0 = vmov 0   ;;  %v610_v3 = vmov 0.0   ;;  %v261_v7 = vld [vmem:[%s214_s28] sm:$0xff]  ;;  %v262_v9 = vld [vmem:[%s214_s28 + $0x8] sm:$0xff]  ;;  %v267_v32 = vlaneseq }
  0x36   : > { %501 = vset.pattern.permute.xlu0 %v609_v0  ;;  %p248_p8 = scmp.lt.s32.totalorder %s748_s5, 5  ;;  %v263_v10 = vld [vmem:[%s214_s28 + $0x10] sm:$0xff]  ;;  %v264_v11 = vld [vmem:[%s214_s28 + $0x18] sm:$0xff]  ;;  %v257_v16 = vld [vmem:[%s737_s26] sm:$0xff]  ;;  %v270_v34 = vstv %s748_s5  ;;  %vm313_vm2 = vcmask 1041409   ;;  %vm317_vm4 = vcmask 58368  }
  0x37   : > { %v259_v14 = vld [vmem:[%s737_s26 + $0x10] sm:$0xff]  ;;  %v260_v15 = vld [vmem:[%s737_s26 + $0x18] sm:$0xff]  ;;  %v258_v17 = vld [vmem:[%s737_s26 + $0x8] sm:$0xff]  ;;  %v268_v33 = vshrl.u32 %v267_v32, 7  ;;  %v310_v35 = vand.u32 127, %v267_v32  ;;  %p254_p7 = scmp.lt.s32.totalorder %s650_s16, 2 }
  0x38   : > { %s249_s19 = scalar_select %p248_p8, %s748_s5, 5  ;;  %vm330_vm5 = vcmask 0  }
  0x39   : > { %v271_v36 = vadd.s32 %v270_v34, %v268_v33  ;;  %s791_s16 = smov (!%p254_p7, %s650_s16), 2 }
  0x3a   : > { %s441_s21 = sshll.u32 %s249_s19, 3  ;;  %s256_s11 = scalar_lea.vmem %s781_s3, %s791_s16 }
  0x3b   : > { %s251_s8 = scalar_lea.vmem %s779_s1, %s441_s21  ;;  %vm272_vm3 = vcmp.lt.s32.totalorder %v271_v36, 5 }
  0x3c   : > { %v265_v1 = vld [vmem:[%s251_s8] sm:$0xff]  ;;  %v266_v2 = vld [vmem:[%s251_s8 + $0x8] sm:$0xff] }
  0x3d   : > { %vm273_vm0 = vcmp.gt.f32.partialorder %v265_v1, 1.0  ;;  %vm274_vm1 = vcmp.gt.f32.partialorder %v266_v2, 1.0 }
  0x3e   : > { %v443_v4 = vsel %vm273_vm0, 1.0, %v610_v3  ;;  %v444_v5 = vsel %vm274_vm1, 1.0, %v610_v3 }
  0x3f   : > { %v502_v6 = vpack.i.bf16 %v444_v5, %v443_v4 }
  0x41   : > { %503 = vperm.xlu0 %501, %v502_v6  }
  0xb3   : > { %v504_v8 = vpop.permute.xlu0 %503 }
  0xb4   : > { %v506_v12 = vunpack.i.h.bf16 %v504_v8  ;;  %v505_v13 = vunpack.i.l.bf16 %v504_v8 }
  0xb6   : > { %v289_v18 = vmul.f32 %v505_v13, %v261_v7  ;;  %v290_v19 = vmul.f32 %v505_v13, %v262_v9  ;;  %v291_v20 = vmul.f32 %v506_v12, %v263_v10  ;;  %v292_v21 = vmul.f32 %v506_v12, %v264_v11 }
  0xb8   : > { %v295_v22 = vsub.f32 %v259_v14, %v291_v20  ;;  %v296_v23 = vsub.f32 %v260_v15, %v292_v21  ;;  %v293_v24 = vsub.f32 %v257_v16, %v289_v18  ;;  %v294_v25 = vsub.f32 %v258_v17, %v290_v19 }
  0xba   : > { %v299_v26 = vmul.f32 %v295_v22, %v295_v22  ;;  %v300_v27 = vmul.f32 %v296_v23, %v296_v23  ;;  %v297_v28 = vmul.f32 %v293_v24, %v293_v24  ;;  %v298_v29 = vmul.f32 %v294_v25, %v294_v25 }
  0xbc   : > { %v304_v30 = vadd.f32 %v300_v27, %v299_v26  ;;  %v301_v31 = vadd.f32 %v298_v29, %v297_v28 }
  0xbe   : > { %305 = vadd.xlane.f32.xlu1 %v304_v30  ;;  %302 = vadd.xlane.f32.xlu0 %v301_v31 }
 0x131   : > { %v306_v37 = vpop.xlane.xlu1 %305  ;;  %v303_v38 = vpop.xlane.xlu0 %302 }
 0x132   : > { %v312_v39 = vperm.slane %v306_v37, %v310_v35  ;;  %v311_v40 = vperm.slane %v303_v38, %v310_v35 }
 0x134   : > { %v314_v41 = vsel %vm313_vm2, %v312_v39, %v311_v40 }
 0x135   : > { %v316_v42 = vsel %vm272_vm3, %v314_v41, 0.0 }
 0x136   : > { %v318_v43 = vsel %vm317_vm4, %v316_v42, 0.0 }
 0x137   : > { %319 = vadd.xlane.f32.xlu1 %v318_v43 }
 0x1aa   : > { %v320_v44 = vpop.xlane.xlu1 %319 }
 0x1ab   : > { %v321_v45 = vrot.slane %v320_v44, 4 }
 0x1ad   : > { %v322_v46 = vadd.f32 %v321_v45, %v320_v44 }
 0x1af   : > { %v323_v47 = vrot.slane %v322_v46, 2 }
 0x1b1   : > { %v324_v48 = vadd.f32 %v323_v47, %v322_v46 }
 0x1b3   : > { %v325_v49 = vrot.slane %v324_v48, 1 }
 0x1b5   : > { %v326_v50 = vadd.f32 %v325_v49, %v324_v48 }
 0x1b7   : > { %451 = vpush %v326_v50 }
 0x1e8   : > { %s452_s22 = spop %451 }
 0x1e9   : > { %s328_s30 = smul.f32 0.00048828125, %s452_s22 }
 0x1eb   : > { %v329_v51 = vstv %s328_s30 }
 0x1ec   : > { %331 = vst.msk [vmem:[%s256_s11] sm:$0x1] %vm330_vm5, %v329_v51 }
 0x1ed PF: > { %p16_p11 = scmp.ge.s32.totalorder %s653_s17, 5   ;;  %s786_s12 = smov %s597_s13 }
 0x1ee   : > { %s787_s13 = smov %s601_s14  ;;  %s788_s14 = smov %s663_s20 }
 0x1ef   : > { %s789_s15 = smov %s653_s17  ;;  %18 = sbr.rel (!%p16_p11) target bundleno = 5 (0x5), region = 88 }
 0x1f4   :  { %349 = vsyncpa [#allocation3], 1 }
 0x1f5   :  { %351 = vsyncpa [#allocation3 + $0x1], 1 }
 0x1f6   :  { %352 = vsyncpa [#allocation5], 1 }
 0x1f7   :  { %354 = vsyncpa [#allocation5 + $0x1], 1 }

</bundles_post_ra>
